<compile_context>
chip_gen: v7x
topology: tpu7x:2x2x1
jax: 0.10.0
libtpu: 0.0.40
codegen_flags: <defaults>
</compile_context>

<pallas_src>
import math

import jax
import jax.numpy as jnp
from jax import lax
from jax.experimental import pallas as pl
from jax.experimental.pallas import tpu as pltpu


_LOG_1E4 = math.log(1.0e4)  # = -log(1e-4), the only surviving log() constant


def _make_rce_kernel(n_total, tile_n):
    """Kernel writing one per-block partial sum of masked softmax row-sums."""

    def kernel(pred_ref, labels_ref, out_ref):
        t, c = pred_ref.shape
        x = pred_ref[...]                                   # wire dtype (bf16 stays bf16)

        # numerically stable softmax over classes (lane axis):
        # max in the native dtype (exact), upcast only at the exp input.
        m = jnp.max(x, axis=1, keepdims=True)
        e = jnp.exp(x.astype(jnp.float32) - m.astype(jnp.float32))   # (T, C) f32
        s = jnp.sum(e, axis=1, keepdims=True)                        # (T, 1)

        # p = max(e/s, 1e-7) == max(e, 1e-7*s) / s : fold the per-element /s
        # out of the elementwise path (one multiply per row instead of T*C).
        class_ids = lax.broadcasted_iota(jnp.int32, (t, c), 1)
        e_clamped = jnp.maximum(e, jnp.float32(1e-7) * s)
        # exclude the true class (its one-hot clamps to 1.0 -> log = 0 contribution)
        e_off = jnp.where(class_ids == labels_ref[...], jnp.float32(0.0), e_clamped)
        row = jnp.sum(e_off, axis=1, keepdims=True) * pl.reciprocal(s, approx=False)

        # mask padded tail rows: OOB block reads may contain garbage / NaN logits.
        i = pl.program_id(0)
        row_ids = i * tile_n + lax.broadcasted_iota(jnp.int32, (t, 1), 0)
        row = jnp.where(row_ids < n_total, row, jnp.float32(0.0))

        # one (8,128)-aligned slab per block -> unmasked lane-dense store.
        # Only [0,0,0] carries the partial sum; the rest is zero, so the
        # wrapper can jnp.sum the whole (num_blocks, 8, 128) output.
        bs = jnp.sum(row)
        sub = lax.broadcasted_iota(jnp.int32, (1, 8, 128), 1)
        lane = lax.broadcasted_iota(jnp.int32, (1, 8, 128), 2)
        out_ref[...] = jnp.where((sub == 0) & (lane == 0), bs, jnp.float32(0.0))

    return kernel


def _vmem_plan():
    """(scoped vmem limit, per-block working-set budget), generation aware."""
    vmem_total = 64 * 1024 * 1024          # conservative default (v7x per-TC VMEM)
    try:
        info = pltpu.get_tpu_info()
        v = getattr(info, "vmem_capacity_bytes", None)
        if v:
            vmem_total = int(v)
    except Exception:
        pass
    if vmem_total > 96 * 1024 * 1024:      # v5e / v6e: 128 MiB physical VMEM
        limit = 96 * 1024 * 1024
    else:                                  # v7x: 64 MiB per TensorCore
        limit = 48 * 1024 * 1024
    budget = limit - 8 * 1024 * 1024       # headroom below the scoped limit
    return limit, budget


def _pick_tile_n(n, c, dtype, vmem_budget_bytes):
    """Rows per block: big enough to amortize per-step overhead, VMEM-safe."""
    itemsize = jnp.dtype(dtype).itemsize
    c_pad = pl.cdiv(c, 128) * 128                    # lane padding of the class axis
    # sub-32-bit dtypes pack rows along sublanes: 8 (f32), 16 (bf16), 32 (8-bit)
    row_mult = max(8, 8 * (4 // max(1, itemsize)))

    # per-row VMEM: 2x double-buffered wire-dtype input + ~3 f32 intermediate tiles
    per_row = 2 * c_pad * itemsize + 3 * c_pad * 4
    rows = vmem_budget_bytes // per_row
    # cap the wire-dtype pred slab per block at 16 MiB (plenty to amortize the
    # ~0.35 us per-step overhead on every generation)
    rows = min(rows, (16 * 1024 * 1024) // (c_pad * itemsize))
    rows = max(row_mult, (rows // row_mult) * row_mult)

    # keep both v7x TensorCores fed and leave room for DMA/compute overlap:
    # aim for >= 4 blocks (>= 2 for small batches) when the batch allows it.
    if n >= 4 * row_mult:
        cap = pl.cdiv(pl.cdiv(n, 4), row_mult) * row_mult
        rows = min(rows, cap)
    elif n >= 2 * row_mult:
        cap = pl.cdiv(pl.cdiv(n, 2), row_mult) * row_mult
        rows = min(rows, cap)

    if n <= rows:
        return n                                     # single block == full dim (always legal)
    return int(rows)


def reverse_cross_entropy(pred, labels, num_classes, scale=1.0, tile_n=None):
    """pred: (N, num_classes) float logits (any float dtype); labels: (N,) ints."""
    n, c = pred.shape
    assert c == num_classes
    labels2d = labels.reshape(n, 1).astype(jnp.int32)

    vmem_limit, vmem_budget = _vmem_plan()
    if tile_n is None:
        tile_n = _pick_tile_n(n, c, pred.dtype, vmem_budget)
    num_blocks = pl.cdiv(n, tile_n)

    itemsize = jnp.dtype(pred.dtype).itemsize
    cost = pl.CostEstimate(
        flops=int(6 * n * c),
        transcendentals=int(n * c),
        bytes_accessed=int(n * c * itemsize + n * 4 + num_blocks * 8 * 128 * 4),
    )

    partials = pl.pallas_call(
        _make_rce_kernel(n, tile_n),
        out_shape=jax.ShapeDtypeStruct((num_blocks, 8, 128), jnp.float32),
        grid=(num_blocks,),
        in_specs=[
            pl.BlockSpec((tile_n, c), lambda i: (i, 0)),
            pl.BlockSpec((tile_n, 1), lambda i: (i, 0)),
        ],
        out_specs=pl.BlockSpec((1, 8, 128), lambda i: (i, 0, 0)),
        compiler_params=pltpu.CompilerParams(
            dimension_semantics=("parallel",),
            vmem_limit_bytes=vmem_limit,
        ),
        cost_estimate=cost,
    )(pred, labels2d)  # pred kept in its native dtype (no host-side upcast)

    # finalize: fold scale * ln(1e4) / N into one scalar multiply
    return (scale * _LOG_1E4 / n) * jnp.sum(partials)


def _reference(pred, labels, num_classes, scale=1.0):
    p = jax.nn.softmax(pred.astype(jnp.float32), axis=1)
    p = jnp.clip(p, 1e-07, 1.0)
    oh = jax.nn.one_hot(labels, num_classes, dtype=jnp.float32)
    oh = jnp.clip(oh, 1e-4, 1.0)
    rce = -jnp.sum(p * jnp.log(oh), axis=1)
    return scale * jnp.mean(rce)


if __name__ == "__main__":
    key = jax.random.PRNGKey(0)
    k_pred, k_lab, k_pred2, k_lab2 = jax.random.split(key, 4)

    # primary check: small classification head, single tile
    batch, num_classes, scale = 8, 32, 1.0
    pred = jax.random.normal(k_pred, (batch, num_classes), dtype=jnp.float32)
    labels = jax.random.randint(k_lab, (batch,), 0, num_classes, dtype=jnp.int32)

    out = jax.block_until_ready(
        reverse_cross_entropy(pred, labels, num_classes, scale))
    ref = _reference(pred, labels, num_classes, scale)
    assert jnp.allclose(out, ref, rtol=1e-5, atol=1e-5), (out, ref)

    # secondary check: multi-tile grid with a padded (masked) remainder block
    batch2 = 20
    pred2 = jax.random.normal(k_pred2, (batch2, num_classes), dtype=jnp.float32)
    labels2 = jax.random.randint(k_lab2, (batch2,), 0, num_classes, dtype=jnp.int32)

    out2 = jax.block_until_ready(
        reverse_cross_entropy(pred2, labels2, num_classes, scale=2.0, tile_n=8))
    ref2 = _reference(pred2, labels2, num_classes, scale=2.0)
    assert jnp.allclose(out2, ref2, rtol=1e-5, atol=1e-5), (out2, ref2)

    # tertiary check: auto tile picker on a larger batch (>= 2 blocks path)
    batch3 = 40
    pred3 = jax.random.normal(k_pred, (batch3, num_classes), dtype=jnp.bfloat16)
    labels3 = jax.random.randint(k_lab, (batch3,), 0, num_classes, dtype=jnp.int32)
    out3 = jax.block_until_ready(
        reverse_cross_entropy(pred3, labels3, num_classes, scale=0.5))
    ref3 = _reference(pred3, labels3, num_classes, scale=0.5)
    assert jnp.allclose(out3, ref3, rtol=5e-3, atol=5e-3), (out3, ref3)

    print("KERNEL_OK")
</pallas_src>

<mosaic_0001>
module attributes {stable_mosaic.version = 11 : i64} {
  func.func @kernel(%arg0: i32, %arg1: memref<8x32xf32, #tpu.memory_space<vmem>>, %arg2: memref<8x1xi32, #tpu.memory_space<vmem>>, %arg3: memref<1x8x128xf32, #tpu.memory_space<vmem>>) attributes {dimension_semantics = [#tpu.dimension_semantics<parallel>], iteration_bounds = array<i64: 1>, scalar_prefetch = 0 : i64, scratch_operands = 0 : i64, tpu.core_type = #tpu.core_type<tc>, window_params = [{transform_indices = @transform_0, window_bounds = array<i64: 8, 32>}, {transform_indices = @transform_1, window_bounds = array<i64: 8, 1>}, {transform_indices = @transform_2, window_bounds = array<i64: 1, 8, 128>}]} {
    %c0 = arith.constant 0 : index
    %c0_0 = arith.constant 0 : index
    %0 = vector.load %arg1[%c0, %c0_0] : memref<8x32xf32, #tpu.memory_space<vmem>>, vector<8x32xf32>
    %cst = arith.constant dense<0xFF800000> : vector<8xf32>
    %1 = vector.multi_reduction <maximumf>, %0, %cst [1] : vector<8x32xf32> to vector<8xf32>
    %2 = vector.shape_cast %1 : vector<8xf32> to vector<8x1xf32>
    %3 = vector.broadcast %2 : vector<8x1xf32> to vector<8x32xf32>
    %4 = arith.subf %0, %3 : vector<8x32xf32>
    %5 = math.exp %4 : vector<8x32xf32>
    %cst_1 = arith.constant dense<0.000000e+00> : vector<8xf32>
    %6 = vector.multi_reduction <add>, %5, %cst_1 [1] : vector<8x32xf32> to vector<8xf32>
    %7 = vector.shape_cast %6 : vector<8xf32> to vector<8x1xf32>
    %8 = tpu.iota {dimensions = array<i32: 1>} : vector<8x32xi32>
    %cst_2 = arith.constant 1.000000e-07 : f32
    %9 = vector.broadcast %cst_2 : f32 to vector<8x1xf32>
    %10 = arith.mulf %9, %7 : vector<8x1xf32>
    %11 = vector.broadcast %10 : vector<8x1xf32> to vector<8x32xf32>
    %12 = arith.maximumf %5, %11 : vector<8x32xf32>
    %c0_3 = arith.constant 0 : index
    %c0_4 = arith.constant 0 : index
    %13 = vector.load %arg2[%c0_3, %c0_4] : memref<8x1xi32, #tpu.memory_space<vmem>>, vector<8x1xi32>
    %14 = vector.broadcast %13 : vector<8x1xi32> to vector<8x32xi32>
    %15 = arith.cmpi eq, %8, %14 : vector<8x32xi32>
    %cst_5 = arith.constant 0.000000e+00 : f32
    %16 = vector.broadcast %cst_5 : f32 to vector<8x32xf32>
    %17 = arith.select %15, %16, %12 : vector<8x32xi1>, vector<8x32xf32>
    %cst_6 = arith.constant dense<0.000000e+00> : vector<8xf32>
    %18 = vector.multi_reduction <add>, %17, %cst_6 [1] : vector<8x32xf32> to vector<8xf32>
    %19 = vector.shape_cast %18 : vector<8xf32> to vector<8x1xf32>
    %20 = tpu.reciprocal %7 : vector<8x1xf32> -> vector<8x1xf32>
    %21 = arith.mulf %19, %20 : vector<8x1xf32>
    %c8_i32 = arith.constant 8 : i32
    %22 = arith.muli %arg0, %c8_i32 : i32
    %23 = tpu.iota {dimensions = array<i32: 0>} : vector<8x1xi32>
    %24 = vector.broadcast %22 : i32 to vector<8x1xi32>
    %25 = arith.addi %24, %23 : vector<8x1xi32>
    %c8_i32_7 = arith.constant 8 : i32
    %26 = vector.broadcast %c8_i32_7 : i32 to vector<8x1xi32>
    %27 = arith.cmpi slt, %25, %26 : vector<8x1xi32>
    %cst_8 = arith.constant 0.000000e+00 : f32
    %28 = vector.broadcast %cst_8 : f32 to vector<8x1xf32>
    %29 = arith.select %27, %21, %28 : vector<8x1xi1>, vector<8x1xf32>
    %30 = vector.shape_cast %29 : vector<8x1xf32> to vector<1x8x1xf32>
    %cst_9 = arith.constant dense<0.000000e+00> : vector<1xf32>
    %31 = vector.multi_reduction <add>, %30, %cst_9 [1, 2] : vector<1x8x1xf32> to vector<1xf32>
    %32 = vector.shape_cast %31 : vector<1xf32> to vector<1x1x1xf32>
    %33 = vector.extract %32[0, 0, 0] : f32 from vector<1x1x1xf32>
    %34 = tpu.iota {dimensions = array<i32: 1>} : vector<1x8x128xi32>
    %35 = tpu.iota {dimensions = array<i32: 2>} : vector<1x8x128xi32>
    %c0_i32 = arith.constant 0 : i32
    %36 = vector.broadcast %c0_i32 : i32 to vector<1x8x128xi32>
    %37 = arith.cmpi eq, %34, %36 : vector<1x8x128xi32>
    %c0_i32_10 = arith.constant 0 : i32
    %38 = vector.broadcast %c0_i32_10 : i32 to vector<1x8x128xi32>
    %39 = arith.cmpi eq, %35, %38 : vector<1x8x128xi32>
    %40 = arith.andi %37, %39 : vector<1x8x128xi1>
    %cst_11 = arith.constant 0.000000e+00 : f32
    %41 = vector.broadcast %33 : f32 to vector<1x8x128xf32>
    %42 = vector.broadcast %cst_11 : f32 to vector<1x8x128xf32>
    %43 = arith.select %40, %41, %42 : vector<1x8x128xi1>, vector<1x8x128xf32>
    %c0_12 = arith.constant 0 : index
    %c0_13 = arith.constant 0 : index
    %c0_14 = arith.constant 0 : index
    %44 = vector.load %arg3[%c0_12, %c0_13, %c0_14] : memref<1x8x128xf32, #tpu.memory_space<vmem>>, vector<1x8x128xf32>
    tpu.vector_store %arg3[%c0_12, %c0_13, %c0_14], %43 {strides = array<i32>} : memref<1x8x128xf32, #tpu.memory_space<vmem>>, vector<1x8x128xf32>,
    return
  }
  func.func @transform_0(%arg0: i32) -> (i32, i32) {
    %c0_i32 = arith.constant 0 : i32
    %c0_i32_0 = arith.constant 0 : i32
    return %arg0, %c0_i32 : i32, i32
  }
  func.func @transform_1(%arg0: i32) -> (i32, i32) {
    %c0_i32 = arith.constant 0 : i32
    %c0_i32_0 = arith.constant 0 : i32
    return %arg0, %c0_i32 : i32, i32
  }
  func.func @transform_2(%arg0: i32) -> (i32, i32, i32) {
    %c0_i32 = arith.constant 0 : i32
    %c0_i32_0 = arith.constant 0 : i32
    %c0_i32_1 = arith.constant 0 : i32
    return %arg0, %c0_i32, %c0_i32_0 : i32, i32, i32
  }
}

</mosaic_0001>

<bundles_post_ra>
// kernel: tpu_custom_call.1
= control target key start
LH: loop header
LB: loop body
LE: loop exit
PB: predicated region body
PF: predicated region fallthrough
CT: control target
= control target key end

     0   :  { %vm13_vm0 = vcmask 261120   ;;  %s148_s0 = inlined_call_operand.vmem [shape: f32[8,32], index: 0, kind: input, shape index: {}]   ;;  %s149_s1 = inlined_call_operand.vmem [shape: s32[8,1], index: 1, kind: input, shape index: {}]   ;;  %s150_s2 = inlined_call_operand.hbm [shape: f32[1,8,128], index: 2, kind: output, shape index: {}]  }
   0x1   :  { %v12_v0 = vld [vmem:[%s148_s0] sm:$0xff] }
   0x2   :  { %7 = vsyncpa [#allocation3], 0  ;;  %v14_v1 = vsel %vm13_vm0, %v12_v0, -inf  ;;  %v27_v2 = vld [vmem:[%s149_s1] sm:$0xff]  ;;  %v110_v3 = vmov 0   ;;  %v23_v9 = vlaneseq  ;;  %vm45_vm2 = vcmask 7168  }
   0x3   :  { %15 = vmax.xlane.f32.xlu0 %v14_v1  ;;  %80 = vset.pattern.permute.xlu1 %v110_v3  ;;  %s111_s0 = smov [#allocation2]  }
   0x4   :  { %81 = vset.pattern.permute.xlu0 %v110_v3  ;;  %29 = vperm.xlu1 %80, %v27_v2   ;;  %v24_v10 = vand.u32 127, %v23_v9  ;;  %v40_v28 = vshrl.u32 %v23_v9, 7  ;;  %s68_s1 = sshll.u32 %s111_s0, 4  ;;  %s69_s1 = int_to_ptr.vmem [resolvable:$true] %s68_s1 }
   0x5   :  { %s86_s14 = scalar_lea.vmem %s69_s1, 128  ;;  %p91_p1 = scmp.lt.s32.totalorder %s69_s1, %s69_s1 }
   0x6   :  { %vm56_vm3 = vcmp.eq.s32.totalorder %v40_v28, 0  ;;  %vm57_vm4 = vcmp.eq.s32.totalorder %v24_v10, 0  ;;  %p87_p0 = scmp.ne.s32.totalorder %s69_s1, %s86_s14  ;;  %p92_p2 = scmp.lt.s32.totalorder %s86_s14, %s86_s14 }
   0x7   :  { %vm58_vm5 = vmand %vm56_vm3, %vm57_vm4 }
   0x8   :  { %p93_p3 = por %p92_p2, %p91_p1 }
   0xa   :  { %p94_p4 = pnand %p93_p3, %p87_p0 }
  0x83   :  { %v30_v11 = vpop.permute.xlu1 %29 }
  0x84   :  { %vm31_vm1 = vcmp.eq.s32.totalorder %v24_v10, %v30_v11 }
  0x90   :  { %v16_v4 = vpop.xlane.xlu0 %15 }
  0x91   :  { %v17_v5 = vsub.f32 %v12_v0, %v16_v4 }
  0x93   :  { %v18_v6 = vmul.f32 1.442695, %v17_v5 }
  0x95   :  { %82 = vpow2.f32 %v18_v6 }
  0x9f   :  { %v83_v7 = vpop.eup %82 }
  0xa0   :  { %v20_v8 = vsel %vm13_vm0, %v83_v7, 0.0 }
  0xa1   :  { %21 = vadd.xlane.f32.xlu0 %v20_v8 }
 0x12e   :  { %v22_v12 = vpop.xlane.xlu0 %21 }
 0x12f   :  { %v25_v13 = vmul.f32 1e-07, %v22_v12  ;;  %84 = vrcp.f32 %v22_v12 }
 0x131   :  { %v26_v14 = vmax.f32 %v83_v7, %v25_v13 }
 0x133   :  { %v32_v15 = vsel %vm31_vm1, 0.0, %v26_v14 }
 0x134   :  { %v33_v16 = vsel %vm13_vm0, %v32_v15, 0.0 }
 0x135   :  { %34 = vadd.xlane.f32.xlu1 %v33_v16 }
 0x139   :  { %v85_v17 = vpop.eup %84 }
 0x1c2   :  { %v35_v18 = vpop.xlane.xlu1 %34 }
 0x1c3   :  { %v37_v19 = vmul.f32 %v85_v17, %v35_v18 }
 0x1c5   :  { %v46_v20 = vsel %vm45_vm2, %v37_v19, 0.0 }
 0x1c6   :  { %47 = vadd.xlane.f32.xlu0 %v46_v20 }
 0x253   :  { %v48_v21 = vpop.xlane.xlu0 %47 }
 0x254   :  { %v49_v22 = vrot.slane %v48_v21, 4 }
 0x256   :  { %v50_v23 = vadd.f32 %v49_v22, %v48_v21 }
 0x258   :  { %v51_v24 = vrot.slane %v50_v23, 2 }
 0x25a   :  { %v52_v25 = vadd.f32 %v51_v24, %v50_v23 }
 0x25c   :  { %v53_v26 = vrot.slane %v52_v25, 1 }
 0x25e   :  { %v54_v27 = vadd.f32 %v53_v26, %v52_v25 }
 0x260   :  { %76 = vpush %v54_v27 }
 0x291   :  { %s77_s13 = spop %76 }
 0x292   :  { %v59_v29 = vstv %s77_s13 }
 0x293   :  { %v60_v30 = vsel %vm58_vm5, %v59_v29, 0.0 }
 0x294   :  { %61 = vst [vmem:[#allocation2] sm:$0xff] %v60_v30 }
 0x295   :  { %97 = shalt.err (!%p94_p4)
}
 0x296   :  { %s98_s17 = scalar_lea.hbm %s150_s2, 128 }
 0x297   :  { %p99_p5 = scmp.ne.s32.totalorder %s150_s2, %s98_s17  ;;  %p102_p6 = scmp.lt.u32.totalorder %s98_s17, %s150_s2 }
 0x299   :  { %p104_p7 = pnand %p102_p6, %p99_p5 }
 0x29b   :  { %107 = shalt.err (!%p104_p7)
}
 0x29c   :  { %71 = dma.vmem_to_hbm [thread:$0]  %s69_s1, 128, %s150_s2, [#allocation3]  }
 0x29d   :  { %108 = dma.done.wait [#allocation3], 128  }
 0x29e   :  { %109 = vsyncadd [#allocation3], 4294967168 }
 0x29f   :  { %75 = vsyncpa [#allocation3], 1 }

</bundles_post_ra>
